<compile_context>
chip_gen: v5e
topology: v5e:2x2
jax: 0.10.0
libtpu: 0.0.40
codegen_flags: <defaults>
</compile_context>

<pallas_src>
import functools

import jax
import jax.numpy as jnp
from jax.experimental import pallas as pl
from jax.experimental.pallas import tpu as pltpu


def _round_up(x, m):
    return ((x + m - 1) // m) * m


def _simpson_vjp_kernel(h3_ref, a_ref, x_ref, out_ref, acc_ref,
                        *, n_intervals, tile_t):
    """One time-tile of  dW_aug += (w * a)^T @ x_aug  with f32 accumulation."""
    t = pl.program_id(0)

    @pl.when(t == 0)
    def _init():
        acc_ref[...] = jnp.zeros_like(acc_ref)

    # Global Simpson weights for this tile: [1, 4, 2, 4, ..., 2, 4, 1] * h/3,
    # and 0 on rows past the last real node (time-axis padding).
    row = jax.lax.broadcasted_iota(jnp.int32, (tile_t, 1), 0) + t * tile_t
    interior = jnp.where(row % 2 == 1, 4.0, 2.0)
    w = jnp.where((row == 0) | (row == n_intervals), 1.0, interior)
    w = jnp.where(row <= n_intervals, w, 0.0)
    w = w * h3_ref[0]                                   # h/3 scalar from SMEM

    cot = w * a_ref[...]                                # (T, Da_pad) f32 cotangent
    # Contract the time axis on the MXU. The ones column of x_ref makes the
    # bias VJP (db = sum_t cot) fall out as one extra output column for free.
    acc_ref[...] += jax.lax.dot_general(
        cot, x_ref[...],
        dimension_numbers=(((0,), (0,)), ((), ())),
        preferred_element_type=jnp.float32,
    )

    @pl.when(t == pl.num_programs(0) - 1)
    def _finalize():
        out_ref[...] = acc_ref[...].astype(out_ref.dtype)


class FixedSimpson:
    """Fixed-step composite Simpson's rule adjoint quadrature (Pallas TPU)."""

    # Time-tile cap: 512 rows x 128 lanes x 4 B x 2 inputs x 2 pipeline buffers
    # ~= 1 MiB of VMEM -- safe on v5e / v6e and on v7x's smaller 64 MiB VMEM.
    _TIME_TILE_MAX = 512

    def __init__(self, N=100):
        if N % 2 != 0:
            N += 1
        self.N = N

    def __call__(self, a_interp_func, x_interp_func, a, b, atol, rtol,
                 params_req, is_nonhomogeneous):
        # atol / rtol are unused for the fixed-step rule (parity with torch).
        del atol, rtol
        w_param = params_req["W"]
        out_dtype = w_param.dtype
        n = self.N
        np1 = n + 1

        # Traced-safe a == b handling: h/3 == 0 zeroes every Simpson weight, so
        # the kernel returns exact zeros (matches torch's zeros_like branch)
        # without a Python-level comparison on possibly-traced endpoints.
        a_f = jnp.asarray(a, jnp.float32)
        b_f = jnp.asarray(b, jnp.float32)
        h3 = jnp.reshape((b_f - a_f) / (3.0 * n), (1,))

        # Pad the time axis to a multiple of 8 (and of the tile size); extra
        # nodes are clamped to b and receive zero weight inside the kernel.
        np1_pad8 = _round_up(np1, 8)
        tile_t = min(np1_pad8, self._TIME_TILE_MAX)
        np1_pad = _round_up(np1, tile_t)
        num_tiles = np1_pad // tile_t

        idx = jnp.minimum(jnp.arange(np1_pad, dtype=jnp.float32), float(n))
        nodes = a_f + (b_f - a_f) * (idx / n)

        # Glue: evaluate the interpolation callables at the (padded) nodes.
        # TODO(synk): for a fully fused path, pass the interpolants' coefficient
        # tables into the kernel and evaluate them on the EUP there, instead of
        # round-tripping a_eval / x_eval through HBM.
        a_eval = jnp.asarray(a_interp_func(nodes), jnp.float32)   # (np1_pad, Da)
        x_eval = jnp.asarray(x_interp_func(nodes), jnp.float32)   # (np1_pad, Dx)
        da = a_eval.shape[-1]
        dx = x_eval.shape[-1]

        # Lane padding to 128; x gets a ones column at index dx so that
        # out[:, dx] == db (bias VJP fused into the same MXU pass).
        da_pad = _round_up(da, 128)
        dx_pad = _round_up(dx + 1, 128)
        a_pad = jnp.pad(a_eval, ((0, 0), (0, da_pad - da)))
        x_pad = jnp.pad(x_eval, ((0, 0), (0, dx_pad - dx)))
        x_pad = x_pad.at[:, dx].set(1.0)

        kernel = functools.partial(
            _simpson_vjp_kernel, n_intervals=n, tile_t=tile_t)

        out = pl.pallas_call(
            kernel,
            grid=(num_tiles,),
            in_specs=[
                pl.BlockSpec(memory_space=pltpu.MemorySpace.SMEM),       # h/3
                pl.BlockSpec((tile_t, da_pad), lambda t: (t, 0)),
                pl.BlockSpec((tile_t, dx_pad), lambda t: (t, 0)),
            ],
            out_specs=pl.BlockSpec((da_pad, dx_pad), lambda t: (0, 0)),
            out_shape=jax.ShapeDtypeStruct((da_pad, dx_pad), out_dtype),
            scratch_shapes=[pltpu.VMEM((da_pad, dx_pad), jnp.float32)],
            compiler_params=pltpu.CompilerParams(
                dimension_semantics=("arbitrary",)),
            cost_estimate=pl.CostEstimate(
                flops=2 * np1_pad * da_pad * dx_pad,
                transcendentals=0,
                bytes_accessed=(np1_pad * (da_pad + dx_pad)
                                + da_pad * dx_pad) * 4,
            ),
        )(h3, a_pad, x_pad)

        grads = {"W": out[:w_param.shape[0], :w_param.shape[1]]}
        if is_nonhomogeneous and "b" in params_req:
            grads["b"] = out[:w_param.shape[0], dx]
        return grads


if __name__ == "__main__":
    key = jax.random.PRNGKey(0)
    k_w, k_b, k_fa, k_pa, k_fx, k_px = jax.random.split(key, 6)

    D = 32
    N = 100                 # module default (even)
    a_t, b_t = 0.0, 1.0

    # Deterministic "parameters requiring gradients" (shapes from the linear-ODE f).
    params_req = {
        "W": jax.random.normal(k_w, (D, D), jnp.float32) * 0.1,
        "b": jax.random.normal(k_b, (D,), jnp.float32) * 0.1,
    }

    # Deterministic analytic stand-ins for the adjoint / state interpolants.
    freq_a = jax.random.uniform(k_fa, (D,), jnp.float32, 0.5, 2.0)
    phase_a = jax.random.uniform(k_pa, (D,), jnp.float32, 0.0, 3.14)
    freq_x = jax.random.uniform(k_fx, (D,), jnp.float32, 0.5, 2.0)
    phase_x = jax.random.uniform(k_px, (D,), jnp.float32, 0.0, 3.14)

    def a_interp_func(t):   # (T,) -> (T, D)
        return jnp.sin(t[:, None] * freq_a[None, :] + phase_a[None, :])

    def x_interp_func(t):   # (T,) -> (T, D)
        return jnp.cos(t[:, None] * freq_x[None, :] + phase_x[None, :])

    integrator = FixedSimpson(N=N)
    grads = integrator(a_interp_func, x_interp_func, a_t, b_t,
                       atol=1e-6, rtol=1e-6,
                       params_req=params_req, is_nonhomogeneous=True)
    jax.block_until_ready(grads)

    # Reference: mirror the torch code with jax.vjp on the same concrete f.
    nodes = jnp.linspace(a_t, b_t, N + 1, dtype=jnp.float32)
    h = (b_t - a_t) / N
    a_eval = a_interp_func(nodes)
    x_eval = x_interp_func(nodes)
    weights = jnp.ones(N + 1, jnp.float32)
    weights = weights.at[1:-1:2].set(4.0).at[2:-1:2].set(2.0) * (h / 3.0)
    cot = weights[:, None] * a_eval

    def f_for_vjp(p):
        return x_eval @ p["W"].T + p["b"]

    _, vjp_fn = jax.vjp(f_for_vjp, params_req)
    ref = vjp_fn(cot)[0]

    assert grads["W"].shape == (D, D) and grads["b"].shape == (D,)
    assert jnp.allclose(grads["W"], ref["W"], rtol=1e-4, atol=1e-5), "dW mismatch"
    assert jnp.allclose(grads["b"], ref["b"], rtol=1e-4, atol=1e-5), "db mismatch"

    # Traced endpoints (jit): exercises the SMEM-scalar h/3 path; a == b must
    # give exact zeros without any Python comparison.
    jitted = jax.jit(lambda aa, bb: integrator(
        a_interp_func, x_interp_func, aa, bb, 1e-6, 1e-6, params_req, True))
    g_jit = jitted(jnp.float32(a_t), jnp.float32(b_t))
    jax.block_until_ready(g_jit)
    assert jnp.allclose(g_jit["W"], ref["W"], rtol=1e-4, atol=1e-5), "jit dW mismatch"
    g_zero = jitted(jnp.float32(0.3), jnp.float32(0.3))
    jax.block_until_ready(g_zero)
    assert jnp.allclose(g_zero["W"], 0.0) and jnp.allclose(g_zero["b"], 0.0), \
        "a == b should integrate to zero"

    print("KERNEL_OK")
</pallas_src>

<mosaic_0001>
module attributes {stable_mosaic.version = 11 : i64} {
  func.func @_simpson_vjp_kernel(%arg0: i32, %arg1: memref<1xf32, #tpu.memory_space<smem>>, %arg2: memref<104x128xf32, #tpu.memory_space<vmem>>, %arg3: memref<104x128xf32, #tpu.memory_space<vmem>>, %arg4: memref<128x128xf32, #tpu.memory_space<vmem>>, %arg5: memref<128x128xf32, #tpu.memory_space<vmem>>) attributes {dimension_semantics = [#tpu.dimension_semantics<arbitrary>], iteration_bounds = array<i64: 1>, scalar_prefetch = 0 : i64, scratch_operands = 1 : i64, tpu.core_type = #tpu.core_type<tc>, window_params = [{transform_indices = @transform_0, window_bounds = array<i64: 1>}, {transform_indices = @transform_1, window_bounds = array<i64: 104, 128>}, {transform_indices = @transform_2, window_bounds = array<i64: 104, 128>}, {pipeline_mode = #tpu.pipeline_mode<synchronous>, transform_indices = @transform_3, window_bounds = array<i64: 128, 128>}]} {
    %c0_i32 = arith.constant 0 : i32
    %0 = arith.cmpi eq, %arg0, %c0_i32 : i32
    %1 = arith.extui %0 : i1 to i32
    %c0_i32_0 = arith.constant 0 : i32
    %2 = arith.cmpi ne, %1, %c0_i32_0 : i32
    scf.if %2 {
      %cst_22 = arith.constant 0.000000e+00 : f32
      %53 = vector.broadcast %cst_22 : f32 to vector<128x128xf32>
      %c0_23 = arith.constant 0 : index
      %c0_24 = arith.constant 0 : index
      %54 = vector.load %arg5[%c0_23, %c0_24] : memref<128x128xf32, #tpu.memory_space<vmem>>, vector<128x128xf32>
      tpu.vector_store %arg5[%c0_23, %c0_24], %53 {strides = array<i32>} : memref<128x128xf32, #tpu.memory_space<vmem>>, vector<128x128xf32>,
    } else {
    }
    %3 = tpu.iota {dimensions = array<i32: 0>} : vector<104x1xi32>
    %c104_i32 = arith.constant 104 : i32
    %4 = arith.muli %arg0, %c104_i32 : i32
    %5 = vector.broadcast %4 : i32 to vector<104x1xi32>
    %6 = arith.addi %3, %5 : vector<104x1xi32>
    %c2_i32 = arith.constant 2 : i32
    %c0_i32_1 = arith.constant 0 : i32
    %7 = arith.cmpi eq, %c2_i32, %c0_i32_1 : i32
    %c1_i32 = arith.constant 1 : i32
    %8 = arith.select %7, %c1_i32, %c2_i32 : i32
    %9 = vector.broadcast %8 : i32 to vector<104x1xi32>
    %10 = arith.remsi %6, %9 : vector<104x1xi32>
    %c0_i32_2 = arith.constant 0 : i32
    %11 = vector.broadcast %c0_i32_2 : i32 to vector<104x1xi32>
    %12 = arith.cmpi ne, %10, %11 : vector<104x1xi32>
    %c0_i32_3 = arith.constant 0 : i32
    %13 = vector.broadcast %c0_i32_3 : i32 to vector<104x1xi32>
    %14 = arith.cmpi slt, %10, %13 : vector<104x1xi32>
    %c0_i32_4 = arith.constant 0 : i32
    %15 = arith.cmpi slt, %8, %c0_i32_4 : i32
    %16 = vector.broadcast %15 : i1 to vector<104x1xi1>
    %17 = vector.broadcast %16 : vector<104x1xi1> to vector<104x1xi1>
    %18 = arith.xori %14, %17 : vector<104x1xi1>
    %19 = arith.andi %18, %12 : vector<104x1xi1>
    %20 = vector.broadcast %8 : i32 to vector<104x1xi32>
    %21 = arith.addi %10, %20 : vector<104x1xi32>
    %22 = arith.select %19, %21, %10 : vector<104x1xi1>, vector<104x1xi32>
    %c1_i32_5 = arith.constant 1 : i32
    %23 = vector.broadcast %c1_i32_5 : i32 to vector<104x1xi32>
    %24 = arith.cmpi eq, %22, %23 : vector<104x1xi32>
    %cst = arith.constant 4.000000e+00 : f32
    %cst_6 = arith.constant 2.000000e+00 : f32
    %25 = vector.broadcast %cst : f32 to vector<104x1xf32>
    %26 = vector.broadcast %cst_6 : f32 to vector<104x1xf32>
    %27 = arith.select %24, %25, %26 : vector<104x1xi1>, vector<104x1xf32>
    %c0_i32_7 = arith.constant 0 : i32
    %28 = vector.broadcast %c0_i32_7 : i32 to vector<104x1xi32>
    %29 = arith.cmpi eq, %6, %28 : vector<104x1xi32>
    %c100_i32 = arith.constant 100 : i32
    %30 = vector.broadcast %c100_i32 : i32 to vector<104x1xi32>
    %31 = arith.cmpi eq, %6, %30 : vector<104x1xi32>
    %32 = arith.ori %29, %31 : vector<104x1xi1>
    %cst_8 = arith.constant 1.000000e+00 : f32
    %33 = vector.broadcast %cst_8 : f32 to vector<104x1xf32>
    %34 = arith.select %32, %33, %27 : vector<104x1xi1>, vector<104x1xf32>
    %c100_i32_9 = arith.constant 100 : i32
    %35 = vector.broadcast %c100_i32_9 : i32 to vector<104x1xi32>
    %36 = arith.cmpi sle, %6, %35 : vector<104x1xi32>
    %cst_10 = arith.constant 0.000000e+00 : f32
    %37 = vector.broadcast %cst_10 : f32 to vector<104x1xf32>
    %38 = arith.select %36, %34, %37 : vector<104x1xi1>, vector<104x1xf32>
    %c0 = arith.constant 0 : index
    %39 = memref.load %arg1[%c0] : memref<1xf32, #tpu.memory_space<smem>>
    %40 = vector.broadcast %39 : f32 to vector<104x1xf32>
    %41 = arith.mulf %38, %40 : vector<104x1xf32>
    %c0_11 = arith.constant 0 : index
    %c0_12 = arith.constant 0 : index
    %42 = vector.load %arg2[%c0_11, %c0_12] : memref<104x128xf32, #tpu.memory_space<vmem>>, vector<104x128xf32>
    %43 = vector.broadcast %41 : vector<104x1xf32> to vector<104x128xf32>
    %44 = arith.mulf %43, %42 : vector<104x128xf32>
    %c0_13 = arith.constant 0 : index
    %c0_14 = arith.constant 0 : index
    %45 = vector.load %arg5[%c0_13, %c0_14] : memref<128x128xf32, #tpu.memory_space<vmem>>, vector<128x128xf32>
    %c0_15 = arith.constant 0 : index
    %c0_16 = arith.constant 0 : index
    %46 = vector.load %arg3[%c0_15, %c0_16] : memref<104x128xf32, #tpu.memory_space<vmem>>, vector<104x128xf32>
    %cst_17 = arith.constant dense<0.000000e+00> : vector<128x128xf32>
    %47 = tpu.matmul %44, %46, %cst_17 {dimension_numbers = #tpu.dot_dimension_numbers<[0], [0], [1], [1], [0, 1, 1, 1], [], []>} : vector<104x128xf32>, vector<104x128xf32>, vector<128x128xf32> -> vector<128x128xf32>
    %48 = arith.addf %45, %47 : vector<128x128xf32>
    %c0_18 = arith.constant 0 : index
    %c0_19 = arith.constant 0 : index
    %49 = vector.load %arg5[%c0_18, %c0_19] : memref<128x128xf32, #tpu.memory_space<vmem>>, vector<128x128xf32>
    tpu.vector_store %arg5[%c0_18, %c0_19], %48 {strides = array<i32>} : memref<128x128xf32, #tpu.memory_space<vmem>>, vector<128x128xf32>,
    %c0_i32_20 = arith.constant 0 : i32
    %50 = arith.cmpi eq, %arg0, %c0_i32_20 : i32
    %51 = arith.extui %50 : i1 to i32
    %c0_i32_21 = arith.constant 0 : i32
    %52 = arith.cmpi ne, %51, %c0_i32_21 : i32
    scf.if %52 {
      %c0_22 = arith.constant 0 : index
      %c0_23 = arith.constant 0 : index
      %53 = vector.load %arg5[%c0_22, %c0_23] : memref<128x128xf32, #tpu.memory_space<vmem>>, vector<128x128xf32>
      %c0_24 = arith.constant 0 : index
      %c0_25 = arith.constant 0 : index
      %54 = vector.load %arg4[%c0_24, %c0_25] : memref<128x128xf32, #tpu.memory_space<vmem>>, vector<128x128xf32>
      tpu.vector_store %arg4[%c0_24, %c0_25], %53 {strides = array<i32>} : memref<128x128xf32, #tpu.memory_space<vmem>>, vector<128x128xf32>,
    } else {
    }
    return
  }
  func.func @transform_0(%arg0: i32) -> i32 {
    %c0_i32 = arith.constant 0 : i32
    %c0_i32_0 = arith.constant 0 : i32
    return %c0_i32 : i32
  }
  func.func @transform_1(%arg0: i32) -> (i32, i32) {
    %c0_i32 = arith.constant 0 : i32
    %c0_i32_0 = arith.constant 0 : i32
    return %arg0, %c0_i32 : i32, i32
  }
  func.func @transform_2(%arg0: i32) -> (i32, i32) {
    %c0_i32 = arith.constant 0 : i32
    %c0_i32_0 = arith.constant 0 : i32
    return %arg0, %c0_i32 : i32, i32
  }
  func.func @transform_3(%arg0: i32) -> (i32, i32) {
    %c0_i32 = arith.constant 0 : i32
    %c0_i32_0 = arith.constant 0 : i32
    %c0_i32_1 = arith.constant 0 : i32
    return %c0_i32, %c0_i32_0 : i32, i32
  }
}

</mosaic_0001>

<bundles_post_ra>
// kernel: tpu_custom_call.1
= control target key start
LH: loop header
LB: loop body
LE: loop exit
PB: predicated region body
PF: predicated region fallthrough
CT: control target
= control target key end

     0   :  { %9 = vsyncpa [#allocation5], 0  ;;  %s913_s0 = inlined_call_operand.<no memory space> [shape: f32[1], index: 0, kind: input, shape index: {}]   ;;  %s914_s1 = inlined_call_operand.hbm [shape: f32[104,128], index: 1, kind: input, shape index: {}]   ;;  %s915_s2 = inlined_call_operand.hbm [shape: f32[104,128], index: 2, kind: input, shape index: {}]   ;;  %s916_s3 = inlined_call_operand.hbm [shape: f32[128,128], index: 3, kind: output, shape index: {}]  }
   0x1   :  { %10 = vsyncpa [#allocation8], 0 }
   0x2   :  { %11 = vsyncpa [#allocation6], 0  ;;  %s18_s14 = sshll.u32 %s914_s1, 4  ;;  %s800_s15 = smov [#allocation4]   ;;  %s19_s14 = int_to_ptr.hbm [resolvable:$true] %s18_s14 }
   0x3   :  { %s20_s16 = sshll.u32 %s800_s15, 4  ;;  %s31_s19 = sshll.u32 %s915_s2, 4  ;;  %s21_s16 = int_to_ptr.vmem [resolvable:$true] %s20_s16  ;;  %s32_s19 = int_to_ptr.hbm [resolvable:$true] %s31_s19 }
   0x4   :  { %s801_s20 = smov 128   ;;  %s802_s21 = smov 8  }
   0x5   :  { %26 = dma.hbm_to_vmem [thread:$0]  %s19_s14, 1664, %s21_s16, [#allocation5], %s801_s20, %s801_s20, %s802_s21  }
   0x6   :  { %s803_s22 = smov [#allocation7]  }
   0x7   :  { %s33_s23 = sshll.u32 %s803_s22, 4  ;;  %s34_s23 = int_to_ptr.vmem [resolvable:$true] %s33_s23 }
   0x8   :  { %39 = dma.hbm_to_vmem [thread:$0]  %s32_s19, 1664, %s34_s23, [#allocation8], %s801_s20, %s801_s20, %s802_s21  }
   0x9   :  { %794 = dma.done.wait [#allocation5], 1664  }
   0xa   :  { %795 = vsyncadd [#allocation5], 4294965632 }
   0xb   :  { %796 = dma.done.wait [#allocation8], 1664  }
   0xc   :  { %797 = vsyncadd [#allocation8], 4294965632  ;;  %v68_v0 = vlaneseq  ;;  %v846_v4 = vstv %s913_s0  ;;  %v804_v6 = vmov 2.0   ;;  %v372_v10 = vld [vmem:[#allocation4] sm:$0xff]  ;;  %v373_v16 = vld [vmem:[#allocation4 + $0x8] sm:$0xff]  ;;  %s805_s0 = smov [#allocation9]  }
   0xd   :  { %v374_v22 = vld [vmem:[#allocation4 + $0x10] sm:$0xff]  ;;  %v375_v28 = vld [vmem:[#allocation4 + $0x18] sm:$0xff]  ;;  %v376_v36 = vld [vmem:[#allocation4 + $0x20] sm:$0xff]  ;;  %s644_s24 = sshll.u32 %s805_s0, 4  ;;  %s646_s27 = sshll.u32 %s916_s3, 4  ;;  %s645_s24 = int_to_ptr.vmem [resolvable:$true] %s644_s24  ;;  %s647_s27 = int_to_ptr.hbm [resolvable:$true] %s646_s27 }
   0xe   :  { %v838_v1 = vshrl.u32 %v68_v0, 7  ;;  %v377_v46 = vld [vmem:[#allocation4 + $0x28] sm:$0xff]  ;;  %v378_v56 = vld [vmem:[#allocation4 + $0x30] sm:$0xff]  ;;  %v379_v0 = vld [vmem:[#allocation4 + $0x38] sm:$0xff] }
  0x10   :  { %v101_v2 = vand.u32 1, %v838_v1  ;;  %v70_v3 = vadd.s32 8, %v838_v1  ;;  %vm279_vm0 = vcmp.eq.s32.totalorder %v838_v1, 0  ;;  %v71_v8 = vadd.s32 16, %v838_v1 }
  0x11   :  { %v72_v17 = vadd.s32 24, %v838_v1  ;;  %v73_v23 = vadd.s32 32, %v838_v1  ;;  %v74_v29 = vadd.s32 40, %v838_v1  ;;  %v77_v33 = vadd.s32 64, %v838_v1 }
  0x12   :  { %vm253_vm1 = vcmp.eq.s32.totalorder %v101_v2, 1  ;;  %v108_v5 = vand.u32 1, %v70_v3  ;;  %v115_v14 = vand.u32 1, %v71_v8  ;;  %v75_v37 = vadd.s32 48, %v838_v1 }
  0x13   :  { %v266_v7 = vsel %vm253_vm1, 4.0, %v804_v6  ;;  %v122_v20 = vand.u32 1, %v72_v17  ;;  %v129_v26 = vand.u32 1, %v73_v23  ;;  %v136_v32 = vand.u32 1, %v74_v29  ;;  %v381_v17 = vld [vmem:[#allocation4 + $0x48] sm:$0xff]  ;;  %v419_v23 = vld [vmem:[#allocation7 + $0x28] sm:$0xff] }
  0x14   :  { %v318_v9 = vsel %vm279_vm0, 1.0, %v266_v7  ;;  %vm254_vm2 = vcmp.eq.s32.totalorder %v108_v5, 1  ;;  %vm255_vm3 = vcmp.eq.s32.totalorder %v115_v14, 1  ;;  %v157_v35 = vand.u32 1, %v77_v33  ;;  %v415_v29 = vld [vmem:[#allocation7 + $0x8] sm:$0xff] }
  0x15   :  { %v359_v11 = vmul.f32 %v846_v4, %v318_v9  ;;  %v267_v12 = vsel %vm254_vm2, 4.0, %v804_v6  ;;  %v268_v19 = vsel %vm255_vm3, 4.0, %v804_v6  ;;  %vm256_vm4 = vcmp.eq.s32.totalorder %v122_v20, 1  ;;  %v380_v9 = vld [vmem:[#allocation4 + $0x40] sm:$0xff]  ;;  %v382_v20 = vld [vmem:[#allocation4 + $0x50] sm:$0xff] }
  0x16   :  { %v360_v15 = vmul.f32 %v846_v4, %v267_v12  ;;  %v361_v21 = vmul.f32 %v846_v4, %v268_v19  ;;  %v269_v25 = vsel %vm256_vm4, 4.0, %v804_v6  ;;  %vm257_vm5 = vcmp.eq.s32.totalorder %v129_v26, 1  ;;  %v423_v19 = vld [vmem:[#allocation7 + $0x48] sm:$0xff]  ;;  %v383_v26 = vld [vmem:[#allocation4 + $0x58] sm:$0xff] }
  0x17   :  { %v385_v13 = vmul.f32 %v372_v10, %v359_v11  ;;  %v362_v27 = vmul.f32 %v846_v4, %v269_v25  ;;  %v270_v31 = vsel %vm257_vm5, 4.0, %v804_v6  ;;  %vm258_vm6 = vcmp.eq.s32.totalorder %v136_v32, 1  ;;  %v417_v25 = vld [vmem:[#allocation7 + $0x18] sm:$0xff] }
  0x18   :  { %v386_v18 = vmul.f32 %v373_v16, %v360_v15  ;;  %v387_v24 = vmul.f32 %v374_v22, %v361_v21  ;;  %v363_v34 = vmul.f32 %v846_v4, %v270_v31  ;;  %vm261_vm7 = vcmp.eq.s32.totalorder %v157_v35, 1  ;;  %v426_v15 = vld [vmem:[#allocation7 + $0x60] sm:$0xff]  ;;  %v425_v16 = vld [vmem:[#allocation7 + $0x58] sm:$0xff]  ;;  %v420_v21 = vld [vmem:[#allocation7 + $0x30] sm:$0xff] }
  0x19   :  { %427 = vxpose.xlu0.b32.start [1/13] (short) %v385_v13, 128  ;;  %v388_v30 = vmul.f32 %v375_v28, %v362_v27  ;;  %v274_v38 = vsel %vm261_vm7, 4.0, %v804_v6  ;;  %v271_v41 = vsel %vm258_vm6, 4.0, %v804_v6  ;;  %v143_v42 = vand.u32 1, %v75_v37  ;;  %511 = vmatpush.msra.mxu0 %v426_v15  ;;  %v416_v27 = vld [vmem:[#allocation7 + $0x10] sm:$0xff]  ;;  %v384_v31 = vld [vmem:[#allocation4 + $0x60] sm:$0xff] }
  0x1a   :  { %v389_v39 = vmul.f32 %v376_v36, %v363_v34  ;;  %v367_v40 = vmul.f32 %v846_v4, %v274_v38  ;;  %v78_v43 = vadd.s32 72, %v838_v1  ;;  %v364_v44 = vmul.f32 %v846_v4, %v271_v41  ;;  %676 = vmatpush.msra.mxu1 %v426_v15  ;;  %677 = vmatpush.msra.mxu2 %v426_v15 }
  0x1b   :  { %vm259_vm8 = vcmp.eq.s32.totalorder %v143_v42, 1  ;;  %v76_v47 = vadd.s32 56, %v838_v1  ;;  %v79_v53 = vadd.s32 80, %v838_v1  ;;  %v80_v61 = vadd.s32 88, %v838_v1  ;;  %678 = vmatpush.msra.mxu3 %v426_v15  ;;  %512 = vmatpush.msra.mxu0 %v425_v16 }
  0x1c   :  { %v164_v45 = vand.u32 1, %v78_v43  ;;  %v390_v49 = vmul.f32 %v377_v46, %v364_v44  ;;  %v272_v51 = vsel %vm259_vm8, 4.0, %v804_v6  ;;  %v81_v7 = vadd.s32 96, %v838_v1  ;;  %v424_v1 = vld [vmem:[#allocation7 + $0x50] sm:$0xff]  ;;  %679 = vmatpush.msra.mxu1 %v425_v16  ;;  %680 = vmatpush.msra.mxu2 %v425_v16 }
  0x1d   :  { %v150_v52 = vand.u32 1, %v76_v47  ;;  %v365_v54 = vmul.f32 %v846_v4, %v272_v51  ;;  %v171_v55 = vand.u32 1, %v79_v53  ;;  %v178_v63 = vand.u32 1, %v80_v61  ;;  %681 = vmatpush.msra.mxu3 %v425_v16  ;;  %513 = vmatpush.msra.mxu0 %v424_v1 }
  0x1e   :  { %vm262_vm9 = vcmp.eq.s32.totalorder %v164_v45, 1  ;;  %v185_v8 = vand.u32 1, %v81_v7  ;;  %vm304_vm14 = vcmp.eq.s32.totalorder %v81_v7, 100  ;;  %vm343_vm15 = vcmp.le.s32.totalorder %v81_v7, 100  ;;  %682 = vmatpush.msra.mxu1 %v424_v1  ;;  %683 = vmatpush.msra.mxu2 %v424_v1 }
  0x1f   :  { %v275_v48 = vsel %vm262_vm9, 4.0, %v804_v6  ;;  %vm260_vm10 = vcmp.eq.s32.totalorder %v150_v52, 1  ;;  %vm263_vm11 = vcmp.eq.s32.totalorder %v171_v55, 1  ;;  %v391_v58 = vmul.f32 %v378_v56, %v365_v54  ;;  %684 = vmatpush.msra.mxu3 %v424_v1  ;;  %514 = vmatpush.msra.mxu0 %v423_v19 }
  0x20   :  { %v368_v50 = vmul.f32 %v846_v4, %v275_v48  ;;  %v276_v57 = vsel %vm263_vm11, 4.0, %v804_v6  ;;  %v273_v60 = vsel %vm260_vm10, 4.0, %v804_v6  ;;  %vm264_vm12 = vcmp.eq.s32.totalorder %v178_v63, 1  ;;  %685 = vmatpush.msra.mxu1 %v423_v19  ;;  %686 = vmatpush.msra.mxu2 %v423_v19 }
  0x21   :  { %428 = vxpose.xlu0.b32.cont [2/13] (short) %v386_v18, 128  ;;  %v369_v59 = vmul.f32 %v846_v4, %v276_v57  ;;  %v366_v62 = vmul.f32 %v846_v4, %v273_v60  ;;  %v277_v2 = vsel %vm264_vm12, 4.0, %v804_v6  ;;  %vm265_vm13 = vcmp.eq.s32.totalorder %v185_v8, 1  ;;  %687 = vmatpush.msra.mxu3 %v423_v19 }
  0x22   :  { %v882_v5 = vmul.f32 %v846_v4, %v277_v2  ;;  %v278_v10 = vsel %vm265_vm13, 4.0, %v804_v6  ;;  %v393_v13 = vmul.f32 %v380_v9, %v367_v40  ;;  %v394_v18 = vmul.f32 %v381_v17, %v368_v50  ;;  %v422_v6 = vld [vmem:[#allocation7 + $0x40] sm:$0xff] }
  0x23   :  { %v392_v3 = vmul.f32 %v379_v0, %v366_v62  ;;  %v330_v11 = vsel %vm304_vm14, 1.0, %v278_v10  ;;  %515 = vmatpush.msra.mxu0 %v422_v6  ;;  %688 = vmatpush.msra.mxu1 %v422_v6  ;;  %v395_v22 = vmul.f32 %v382_v20, %v369_v59  ;;  %vm459_vm0 = vcmask 850944  }
  0x24   :  { %v356_v12 = vsel %vm343_vm15, %v330_v11, 0.0  ;;  %689 = vmatpush.msra.mxu2 %v422_v6  ;;  %690 = vmatpush.msra.mxu3 %v422_v6  ;;  %v396_v28 = vmul.f32 %v383_v26, %v882_v5 }
  0x25   :  { %v887_v14 = vmul.f32 %v846_v4, %v356_v12  ;;  %v421_v4 = vld [vmem:[#allocation7 + $0x38] sm:$0xff] }
  0x26   :  { %516 = vmatpush.msra.mxu0 %v421_v4  ;;  %691 = vmatpush.msra.mxu1 %v421_v4 }
  0x27   :  { %692 = vmatpush.msra.mxu2 %v421_v4  ;;  %693 = vmatpush.msra.mxu3 %v421_v4  ;;  %v397_v32 = vmul.f32 %v384_v31, %v887_v14 }
  0x28   :  { %517 = vmatpush.msra.mxu0 %v420_v21  ;;  %694 = vmatpush.msra.mxu1 %v420_v21 }
  0x29   :  { %429 = vxpose.xlu0.b32.cont [3/13] (short) %v387_v24, 128  ;;  %v418_v24 = vld [vmem:[#allocation7 + $0x20] sm:$0xff]  ;;  %695 = vmatpush.msra.mxu2 %v420_v21 }
  0x2a   :  { %518 = vmatpush.msra.mxu0 %v419_v23  ;;  %697 = vmatpush.msra.mxu1 %v419_v23 }
  0x2b   :  { %698 = vmatpush.msra.mxu2 %v419_v23  ;;  %696 = vmatpush.msra.mxu3 %v420_v21 }
  0x2c   :  { %519 = vmatpush.msra.mxu0 %v418_v24  ;;  %700 = vmatpush.msra.mxu1 %v418_v24 }
  0x2d   :  { %701 = vmatpush.msra.mxu2 %v418_v24  ;;  %699 = vmatpush.msra.mxu3 %v419_v23 }
  0x2e   :  { %520 = vmatpush.msra.mxu0 %v417_v25  ;;  %703 = vmatpush.msra.mxu1 %v417_v25 }
  0x2f   :  { %704 = vmatpush.msra.mxu2 %v417_v25  ;;  %702 = vmatpush.msra.mxu3 %v418_v24 }
  0x30   :  { %521 = vmatpush.msra.mxu0 %v416_v27  ;;  %706 = vmatpush.msra.mxu1 %v416_v27 }
  0x31   :  { %430 = vxpose.xlu0.b32.cont [4/13] (short) %v388_v30, 128  ;;  %v414_v30 = vld [vmem:[#allocation7] sm:$0xff]  ;;  %707 = vmatpush.msra.mxu2 %v416_v27 }
  0x32   :  { %522 = vmatpush.msra.mxu0 %v415_v29  ;;  %709 = vmatpush.msra.mxu1 %v415_v29 }
  0x33   :  { %710 = vmatpush.msra.mxu2 %v415_v29  ;;  %705 = vmatpush.msra.mxu3 %v417_v25 }
  0x34   :  { %523 = vmatpush.msra.mxu0 %v414_v30  ;;  %712 = vmatpush.msra.mxu1 %v414_v30 }
  0x35   :  { %713 = vmatpush.msra.mxu2 %v414_v30  ;;  %708 = vmatpush.msra.mxu3 %v416_v27 }
  0x37   :  { %711 = vmatpush.msra.mxu3 %v415_v29 }
  0x39   :  { %431 = vxpose.xlu0.b32.cont [5/13] (short) %v389_v39, 128  ;;  %714 = vmatpush.msra.mxu3 %v414_v30 }
  0x41   :  { %432 = vxpose.xlu0.b32.cont [6/13] (short) %v390_v49, 128 }
  0x49   :  { %433 = vxpose.xlu0.b32.cont [7/13] (short) %v391_v58, 128 }
  0x51   :  { %434 = vxpose.xlu0.b32.cont [8/13] (short) %v392_v3, 128 }
  0x59   :  { %435 = vxpose.xlu0.b32.cont [9/13] (short) %v393_v13, 128 }
  0x61   :  { %436 = vxpose.xlu0.b32.cont [10/13] (short) %v394_v18, 128 }
  0x69   :  { %437 = vxpose.xlu0.b32.cont [11/13] (short) %v395_v22, 128 }
  0x71   :  { %438 = vxpose.xlu0.b32.cont [12/13] (short) %v396_v28, 128 }
  0x79   :  { %439 = vxpose.xlu0.b32.end [13/13] (short) %v397_v32, 128 }
  0xbd   :  { %v443_v33 = vpop.trf.xlu0 }
  0xbe   :  { %660 = vmatmul.msk.f32.vlgmr.msra.gmra.mxu0 %vm459_vm0, %v443_v33 }
  0xc5   :  { %v444_v34 = vpop.trf.xlu0 }
  0xc6   :  { %661 = vmatmul.msk.f32.gmra.mxu0 %vm459_vm0, %v444_v34 }
  0xcd   :  { %v445_v35 = vpop.trf.xlu0 }
  0xce   :  { %662 = vmatmul.msk.f32.gmra.mxu0 %vm459_vm0, %v445_v35 }
  0xd5   :  { %v446_v36 = vpop.trf.xlu0 }
  0xd6   :  { %663 = vmatmul.msk.f32.gmra.mxu0 %vm459_vm0, %v446_v36 }
  0xdd   :  { %v447_v37 = vpop.trf.xlu0 }
  0xde   :  { %664 = vmatmul.msk.f32.vlgmr.msra.gmra.mxu1 %vm459_vm0, %v447_v37 }
  0xe5   :  { %v448_v38 = vpop.trf.xlu0 }
  0xe6   :  { %665 = vmatmul.msk.f32.gmra.mxu1 %vm459_vm0, %v448_v38 }
  0xed   :  { %v449_v39 = vpop.trf.xlu0 }
  0xee   :  { %666 = vmatmul.msk.f32.gmra.mxu1 %vm459_vm0, %v449_v39 }
  0xf5   :  { %v450_v40 = vpop.trf.xlu0 }
  0xf6   :  { %667 = vmatmul.msk.f32.gmra.mxu1 %vm459_vm0, %v450_v40 }
  0xfd   :  { %v451_v41 = vpop.trf.xlu0 }
  0xfe   :  { %668 = vmatmul.msk.f32.vlgmr.msra.gmra.mxu2 %vm459_vm0, %v451_v41 }
 0x105   :  { %v452_v42 = vpop.trf.xlu0 }
 0x106   :  { %669 = vmatmul.msk.f32.gmra.mxu2 %vm459_vm0, %v452_v42 }
 0x10d   :  { %v453_v43 = vpop.trf.xlu0 }
 0x10e   :  { %670 = vmatmul.msk.f32.gmra.mxu2 %vm459_vm0, %v453_v43 }
 0x115   :  { %v454_v44 = vpop.trf.xlu0 }
 0x116   :  { %671 = vmatmul.msk.f32.gmra.mxu2 %vm459_vm0, %v454_v44 }
 0x11d   :  { %v455_v45 = vpop.trf.xlu0 }
 0x11e   :  { %672 = vmatmul.msk.f32.vlgmr.msra.gmra.mxu3 %vm459_vm0, %v455_v45 }
 0x125   :  { %v456_v46 = vpop.trf.xlu0 }
 0x126   :  { %673 = vmatmul.msk.f32.gmra.mxu3 %vm459_vm0, %v456_v46 }
 0x12d   :  { %v457_v47 = vpop.trf.xlu0 }
 0x12e   :  { %674 = vmatmul.msk.f32.gmra.mxu3 %vm459_vm0, %v457_v47 }
 0x135   :  { %v458_v48 = vpop.trf.xlu0 }
 0x136   :  { %675 = vmatmul.msk.f32.gmra.mxu3 %vm459_vm0, %v458_v48 }
 0x13b   :  { %v525_v49 = vpop.f32.mrf.mxu0 }
 0x13c   :  { %624 = vst [vmem:[#allocation9] sm:$0xff] %v525_v49 }
 0x143   :  { %v528_v50 = vpop.f32.mrf.mxu0 }
 0x144   :  { %625 = vst [vmem:[#allocation9 + $0x8] sm:$0xff] %v528_v50 }
 0x14b   :  { %v531_v51 = vpop.f32.mrf.mxu0 }
 0x14c   :  { %626 = vst [vmem:[#allocation9 + $0x10] sm:$0xff] %v531_v51 }
 0x153   :  { %v534_v52 = vpop.f32.mrf.mxu0 }
 0x154   :  { %627 = vst [vmem:[#allocation9 + $0x18] sm:$0xff] %v534_v52 }
 0x15b   :  { %v537_v53 = vpop.f32.mrf.mxu1 }
 0x15c   :  { %628 = vst [vmem:[#allocation9 + $0x20] sm:$0xff] %v537_v53 }
 0x163   :  { %v540_v54 = vpop.f32.mrf.mxu1 }
 0x164   :  { %629 = vst [vmem:[#allocation9 + $0x28] sm:$0xff] %v540_v54 }
 0x16b   :  { %v543_v55 = vpop.f32.mrf.mxu1 }
 0x16c   :  { %630 = vst [vmem:[#allocation9 + $0x30] sm:$0xff] %v543_v55 }
 0x173   :  { %v546_v56 = vpop.f32.mrf.mxu1 }
 0x174   :  { %631 = vst [vmem:[#allocation9 + $0x38] sm:$0xff] %v546_v56 }
 0x181   :  { %v549_v57 = vpop.f32.mrf.mxu2 }
 0x182   :  { %632 = vst [vmem:[#allocation9 + $0x40] sm:$0xff] %v549_v57 }
 0x189   :  { %v552_v58 = vpop.f32.mrf.mxu2 }
 0x18a   :  { %633 = vst [vmem:[#allocation9 + $0x48] sm:$0xff] %v552_v58 }
 0x191   :  { %v555_v59 = vpop.f32.mrf.mxu2 }
 0x192   :  { %634 = vst [vmem:[#allocation9 + $0x50] sm:$0xff] %v555_v59 }
 0x199   :  { %v558_v60 = vpop.f32.mrf.mxu2 }
 0x19a   :  { %635 = vst [vmem:[#allocation9 + $0x58] sm:$0xff] %v558_v60 }
 0x1a1   :  { %v561_v61 = vpop.f32.mrf.mxu3 }
 0x1a2   :  { %636 = vst [vmem:[#allocation9 + $0x60] sm:$0xff] %v561_v61 }
 0x1a9   :  { %v564_v62 = vpop.f32.mrf.mxu3 }
 0x1aa   :  { %637 = vst [vmem:[#allocation9 + $0x68] sm:$0xff] %v564_v62 }
 0x1b1   :  { %v567_v63 = vpop.f32.mrf.mxu3 }
 0x1b2   :  { %638 = vst [vmem:[#allocation9 + $0x70] sm:$0xff] %v567_v63 }
 0x1b9   :  { %v570_v0 = vpop.f32.mrf.mxu3 }
 0x1ba   :  { %639 = vst [vmem:[#allocation9 + $0x78] sm:$0xff] %v570_v0 }
 0x1bb   :  { %652 = dma.vmem_to_hbm [thread:$0]  %s645_s24, 2048, %s647_s27, [#allocation6], %s801_s20, %s801_s20, %s802_s21  }
 0x1bc   :  { %798 = dma.done.wait [#allocation6], 2048  }
 0x1bd   :  { %799 = vsyncadd [#allocation6], 4294965248 }
 0x1be   :  { %657 = vsyncpa [#allocation5], 1 }
 0x1bf   :  { %658 = vsyncpa [#allocation8], 1 }
 0x1c0   :  { %659 = vsyncpa [#allocation6], 1 }

</bundles_post_ra>
